<compile_context>
chip_gen: v7x
topology: tpu7x:2x2x1
jax: 0.10.0
libtpu: 0.0.40
codegen_flags: <defaults>
</compile_context>

<pallas_src>
import math

import jax
import jax.numpy as jnp
from jax.experimental import pallas as pl
from jax.experimental.pallas import tpu as pltpu


# ----------------------------- configuration --------------------------------
DIM = 4          # flow dimensionality (must be even)
HIDDEN = 32      # MLP hidden width of each coupling net
NUM_FLOWS = 4    # number of coupling flows chained together
BATCH = 128      # batch maps to lanes -> multiples of 128 are ideal


# ------------------------------- kernel -------------------------------------
def flow_forward_kernel(x_ref, p1_ref, p2_ref, out_ref):
    """Feature-major layout: batch on lanes.

    x_ref  : (D, TB)          x^T tile
    p1_ref : (K, H, half+1)   [W1^T | b1^T]
    p2_ref : (K, D, H+1)      [W2^T | b2^T]  (scale rows 0:half, shift half:D)
    out_ref: (D+2, TB)        rows [0:D]=z^T, row D=prior_logprob, D+1=log_det
    """
    d, tb = x_ref.shape
    half = d // 2
    k_flows = p1_ref.shape[0]
    hdim = p2_ref.shape[2] - 1

    xa = x_ref[0:half, :]                         # (half, TB) first half of x
    xb = x_ref[half:d, :]                         # (half, TB) second half

    log_det = jnp.zeros((1, tb), jnp.float32)

    # Static Python loop over flows (small, fixed) -> fully unrolled.
    for k in range(k_flows):
        cond = xa if k % 2 == 0 else xb           # conditioner half (no copy)

        w1 = p1_ref[k, :, 0:half]                 # (H, half)
        b1 = p1_ref[k, :, half:half + 1]          # (H, 1)

        # Layer 1: contraction dim == half (tiny) -> VPU broadcast-FMAs
        # (outer products), not a padded MXU pass.
        pre = b1 + w1[:, 0:1] * cond[0:1, :]      # (H, TB)
        for i in range(1, half):
            pre = pre + w1[:, i:i + 1] * cond[i:i + 1, :]
        h = jnp.tanh(pre)                         # (H, TB)

        # Layer 2 (fused scale+shift): one MXU pass, contraction dim == H,
        # N == TB (lane-dense).  Rows 0:half are s^T, rows half:D are t^T.
        w2 = p2_ref[k, :, 0:hdim]                 # (D, H)
        b2 = p2_ref[k, :, hdim:hdim + 1]          # (D, 1)
        st = jnp.dot(w2, h, preferred_element_type=jnp.float32) + b2   # (D, TB)
        s = st[0:half, :]
        t = st[half:d, :]

        upd = (xb if k % 2 == 0 else xa) * jnp.exp(s) + t
        if k % 2 == 0:
            xb = upd
        else:
            xa = upd

        log_det = log_det + jnp.sum(s, axis=0, keepdims=True)   # (1, TB)

    # Standard multivariate normal prior N(0, I_d): one value per lane.
    log_2pi = jnp.float32(math.log(2.0 * math.pi))
    sq = jnp.sum(xa * xa + xb * xb, axis=0, keepdims=True)       # (1, TB)
    prior_logprob = -0.5 * sq - 0.5 * jnp.float32(d) * log_2pi   # (1, TB)

    # Single fused, lane-dense output store.
    out_ref[...] = jnp.concatenate([xa, xb, prior_logprob, log_det], axis=0)


# --------------------------- parameter packing --------------------------------
def prepare_params(w1, b1, w2, b2):
    """One-time repack into kernel layout (call once per parameter set).

    w1:(K,half,H) b1:(K,1,H) w2:(K,H,D) b2:(K,1,D)  ->  p1:(K,H,half+1),
    p2:(K,D,H+1).  Last column of each slab holds the bias.
    """
    w1t = jnp.transpose(w1, (0, 2, 1))                 # (K, H, half)
    b1t = jnp.transpose(b1, (0, 2, 1))                 # (K, H, 1)
    p1 = jnp.concatenate([w1t, b1t], axis=2)           # (K, H, half+1)

    w2t = jnp.transpose(w2, (0, 2, 1))                 # (K, D, H)
    b2t = jnp.transpose(b2, (0, 2, 1))                 # (K, D, 1)
    p2 = jnp.concatenate([w2t, b2t], axis=2)           # (K, D, H+1)
    return p1, p2


def _pick_batch_tile(batch):
    """Largest lane-dense tile <= 2048 that divides the batch (else one tile)."""
    if batch <= 2048:
        return batch
    for tb in (2048, 1024, 512, 256, 128):
        if batch % tb == 0:
            return tb
    return batch   # ragged batch: single full-batch tile (still tiny in VMEM)


# ------------------------------- wrapper -------------------------------------
@jax.jit
def normalizing_flow_forward(x, p1, p2):
    """x: (B, D) f32; p1/p2 from prepare_params.

    Returns (z, prior_logprob, log_det) matching the PyTorch module forward.
    """
    B, D = x.shape
    K, H, _ = p1.shape
    half = D // 2
    assert D == 2 * half

    TB = _pick_batch_tile(B)
    assert B % TB == 0          # constraint: batch must tile evenly
    grid = (B // TB,)

    # x^T under the same jit as the pallas_call (XLA fuses the relayout).
    x_t = x.T                                            # (D, B)

    out = pl.pallas_call(
        flow_forward_kernel,
        out_shape=jax.ShapeDtypeStruct((D + 2, B), jnp.float32),
        grid_spec=pltpu.PrefetchScalarGridSpec(
            num_scalar_prefetch=0,
            grid=grid,
            in_specs=[
                pl.BlockSpec((D, TB), lambda i: (0, i)),           # x^T tile
                pl.BlockSpec((K, H, half + 1), lambda i: (0, 0, 0)),  # p1 slab
                pl.BlockSpec((K, D, H + 1), lambda i: (0, 0, 0)),     # p2 slab
            ],
            out_specs=pl.BlockSpec((D + 2, TB), lambda i: (0, i)),
        ),
        compiler_params=pltpu.CompilerParams(
            # Batch tiles are independent -> shard across v7x's 2 TensorCores.
            dimension_semantics=("parallel",)),
    )(x_t, p1, p2)

    z = out[0:D, :].T                                    # (B, D)
    prior_logprob = out[D, :]                            # (B,)
    log_det = out[D + 1, :]                              # (B,)
    return z, prior_logprob, log_det


# --------------------------- pure-JAX reference -------------------------------
def reference_forward(x, w1, b1, w2, b2):
    B, D = x.shape
    half = D // 2
    K = w1.shape[0]
    log_det = jnp.zeros((B,), jnp.float32)
    for k in range(K):
        if k % 2 == 0:
            x1, x2 = x[:, :half], x[:, half:]
        else:
            x1, x2 = x[:, half:], x[:, :half]
        h = jnp.tanh(x1 @ w1[k] + b1[k])
        st = h @ w2[k] + b2[k]
        s, t = st[:, :half], st[:, half:]
        x2n = x2 * jnp.exp(s) + t
        x = (jnp.concatenate([x1, x2n], -1) if k % 2 == 0
             else jnp.concatenate([x2n, x1], -1))
        log_det = log_det + jnp.sum(s, -1)
    logp = -0.5 * jnp.sum(x * x, -1) - 0.5 * D * math.log(2.0 * math.pi)
    return x, logp, log_det


# --------------------------------- main --------------------------------------
if __name__ == "__main__":
    key = jax.random.PRNGKey(0)
    kx, kw1, kb1, kw2, kb2 = jax.random.split(key, 5)

    half = DIM // 2
    x = jax.random.normal(kx, (BATCH, DIM), jnp.float32)
    # Deterministic small-scale parameter init (keeps exp(s) well-behaved).
    w1 = 0.1 * jax.random.normal(kw1, (NUM_FLOWS, half, HIDDEN), jnp.float32)
    b1 = 0.1 * jax.random.normal(kb1, (NUM_FLOWS, 1, HIDDEN), jnp.float32)
    w2 = 0.1 * jax.random.normal(kw2, (NUM_FLOWS, HIDDEN, DIM), jnp.float32)
    b2 = 0.1 * jax.random.normal(kb2, (NUM_FLOWS, 1, DIM), jnp.float32)

    # One-time parameter repack into kernel layout (not paid per forward call).
    p1, p2 = prepare_params(w1, b1, w2, b2)
    p1, p2 = jax.block_until_ready((p1, p2))

    z, prior_logprob, log_det = normalizing_flow_forward(x, p1, p2)
    jax.block_until_ready((z, prior_logprob, log_det))

    z_r, lp_r, ld_r = reference_forward(x, w1, b1, w2, b2)
    # Tolerance accommodates MXU-vs-VPU accumulation-order differences.
    assert jnp.allclose(z, z_r, atol=5e-3, rtol=5e-3), "z mismatch"
    assert jnp.allclose(prior_logprob, lp_r, atol=5e-3, rtol=5e-3), \
        "prior_logprob mismatch"
    assert jnp.allclose(log_det, ld_r, atol=5e-3, rtol=5e-3), "log_det mismatch"

    # TODO(synk): module's `inverse` / `sample` paths not implemented (forward only).
    print("KERNEL_OK")
</pallas_src>

<mosaic_0001>
module attributes {stable_mosaic.version = 11 : i64} {
  func.func @flow_forward_kernel(%arg0: i32, %arg1: memref<4x128xf32, #tpu.memory_space<vmem>>, %arg2: memref<4x32x3xf32, #tpu.memory_space<vmem>>, %arg3: memref<4x4x33xf32, #tpu.memory_space<vmem>>, %arg4: memref<6x128xf32, #tpu.memory_space<vmem>>) attributes {dimension_semantics = [#tpu.dimension_semantics<parallel>], iteration_bounds = array<i64: 1>, scalar_prefetch = 0 : i64, scratch_operands = 0 : i64, tpu.core_type = #tpu.core_type<tc>, window_params = [{transform_indices = @transform_0, window_bounds = array<i64: 4, 128>}, {pipeline_mode = #tpu.pipeline_mode<synchronous>, transform_indices = @transform_1, window_bounds = array<i64: 4, 32, 3>}, {pipeline_mode = #tpu.pipeline_mode<synchronous>, transform_indices = @transform_2, window_bounds = array<i64: 4, 4, 33>}, {transform_indices = @transform_3, window_bounds = array<i64: 6, 128>}]} {
    %c0 = arith.constant 0 : index
    %c0_0 = arith.constant 0 : index
    %0 = vector.load %arg1[%c0, %c0_0] : memref<4x128xf32, #tpu.memory_space<vmem>>, vector<2x128xf32>
    %c2 = arith.constant 2 : index
    %c0_1 = arith.constant 0 : index
    %1 = vector.load %arg1[%c2, %c0_1] : memref<4x128xf32, #tpu.memory_space<vmem>>, vector<2x128xf32>
    %cst = arith.constant 0.000000e+00 : f32
    %2 = vector.broadcast %cst : f32 to vector<1x128xf32>
    %c0_2 = arith.constant 0 : index
    %c0_3 = arith.constant 0 : index
    %c0_4 = arith.constant 0 : index
    %3 = vector.load %arg2[%c0_2, %c0_3, %c0_4] : memref<4x32x3xf32, #tpu.memory_space<vmem>>, vector<1x32x2xf32>
    %4 = vector.shape_cast %3 : vector<1x32x2xf32> to vector<32x2xf32>
    %c0_5 = arith.constant 0 : index
    %c0_6 = arith.constant 0 : index
    %c2_7 = arith.constant 2 : index
    %5 = vector.load %arg2[%c0_5, %c0_6, %c2_7] : memref<4x32x3xf32, #tpu.memory_space<vmem>>, vector<1x32x1xf32>
    %6 = vector.shape_cast %5 : vector<1x32x1xf32> to vector<32x1xf32>
    %7 = vector.extract_strided_slice %4 {offsets = [0, 0], sizes = [32, 1], strides = [1, 1]} : vector<32x2xf32> to vector<32x1xf32>
    %8 = vector.extract_strided_slice %0 {offsets = [0, 0], sizes = [1, 128], strides = [1, 1]} : vector<2x128xf32> to vector<1x128xf32>
    %9 = vector.broadcast %7 : vector<32x1xf32> to vector<32x128xf32>
    %10 = vector.broadcast %8 : vector<1x128xf32> to vector<32x128xf32>
    %11 = arith.mulf %9, %10 : vector<32x128xf32>
    %12 = vector.broadcast %6 : vector<32x1xf32> to vector<32x128xf32>
    %13 = arith.addf %12, %11 : vector<32x128xf32>
    %14 = vector.extract_strided_slice %4 {offsets = [0, 1], sizes = [32, 1], strides = [1, 1]} : vector<32x2xf32> to vector<32x1xf32>
    %15 = vector.extract_strided_slice %0 {offsets = [1, 0], sizes = [1, 128], strides = [1, 1]} : vector<2x128xf32> to vector<1x128xf32>
    %16 = vector.broadcast %14 : vector<32x1xf32> to vector<32x128xf32>
    %17 = vector.broadcast %15 : vector<1x128xf32> to vector<32x128xf32>
    %18 = arith.mulf %16, %17 : vector<32x128xf32>
    %19 = arith.addf %13, %18 : vector<32x128xf32>
    %20 = math.tanh %19 : vector<32x128xf32>
    %c0_8 = arith.constant 0 : index
    %c0_9 = arith.constant 0 : index
    %c0_10 = arith.constant 0 : index
    %21 = vector.load %arg3[%c0_8, %c0_9, %c0_10] : memref<4x4x33xf32, #tpu.memory_space<vmem>>, vector<1x4x32xf32>
    %22 = vector.shape_cast %21 : vector<1x4x32xf32> to vector<4x32xf32>
    %c0_11 = arith.constant 0 : index
    %c0_12 = arith.constant 0 : index
    %c32 = arith.constant 32 : index
    %23 = vector.load %arg3[%c0_11, %c0_12, %c32] : memref<4x4x33xf32, #tpu.memory_space<vmem>>, vector<1x4x1xf32>
    %24 = vector.shape_cast %23 : vector<1x4x1xf32> to vector<4x1xf32>
    %cst_13 = arith.constant dense<0.000000e+00> : vector<4x128xf32>
    %25 = tpu.matmul %22, %20, %cst_13 {dimension_numbers = #tpu.dot_dimension_numbers<[1], [0], [0], [1], [0, 0, 1, 1], [], []>} : vector<4x32xf32>, vector<32x128xf32>, vector<4x128xf32> -> vector<4x128xf32>
    %26 = vector.broadcast %24 : vector<4x1xf32> to vector<4x128xf32>
    %27 = arith.addf %25, %26 : vector<4x128xf32>
    %28 = vector.extract_strided_slice %27 {offsets = [0, 0], sizes = [2, 128], strides = [1, 1]} : vector<4x128xf32> to vector<2x128xf32>
    %29 = vector.extract_strided_slice %27 {offsets = [2, 0], sizes = [2, 128], strides = [1, 1]} : vector<4x128xf32> to vector<2x128xf32>
    %30 = math.exp %28 : vector<2x128xf32>
    %31 = arith.mulf %1, %30 : vector<2x128xf32>
    %32 = arith.addf %31, %29 : vector<2x128xf32>
    %cst_14 = arith.constant dense<0.000000e+00> : vector<128xf32>
    %33 = vector.multi_reduction <add>, %28, %cst_14 [0] : vector<2x128xf32> to vector<128xf32>
    %34 = vector.shape_cast %33 : vector<128xf32> to vector<1x128xf32>
    %35 = arith.addf %2, %34 : vector<1x128xf32>
    %c1 = arith.constant 1 : index
    %c0_15 = arith.constant 0 : index
    %c0_16 = arith.constant 0 : index
    %36 = vector.load %arg2[%c1, %c0_15, %c0_16] : memref<4x32x3xf32, #tpu.memory_space<vmem>>, vector<1x32x2xf32>
    %37 = vector.shape_cast %36 : vector<1x32x2xf32> to vector<32x2xf32>
    %c1_17 = arith.constant 1 : index
    %c0_18 = arith.constant 0 : index
    %c2_19 = arith.constant 2 : index
    %38 = vector.load %arg2[%c1_17, %c0_18, %c2_19] : memref<4x32x3xf32, #tpu.memory_space<vmem>>, vector<1x32x1xf32>
    %39 = vector.shape_cast %38 : vector<1x32x1xf32> to vector<32x1xf32>
    %40 = vector.extract_strided_slice %37 {offsets = [0, 0], sizes = [32, 1], strides = [1, 1]} : vector<32x2xf32> to vector<32x1xf32>
    %41 = vector.extract_strided_slice %32 {offsets = [0, 0], sizes = [1, 128], strides = [1, 1]} : vector<2x128xf32> to vector<1x128xf32>
    %42 = vector.broadcast %40 : vector<32x1xf32> to vector<32x128xf32>
    %43 = vector.broadcast %41 : vector<1x128xf32> to vector<32x128xf32>
    %44 = arith.mulf %42, %43 : vector<32x128xf32>
    %45 = vector.broadcast %39 : vector<32x1xf32> to vector<32x128xf32>
    %46 = arith.addf %45, %44 : vector<32x128xf32>
    %47 = vector.extract_strided_slice %37 {offsets = [0, 1], sizes = [32, 1], strides = [1, 1]} : vector<32x2xf32> to vector<32x1xf32>
    %48 = vector.extract_strided_slice %32 {offsets = [1, 0], sizes = [1, 128], strides = [1, 1]} : vector<2x128xf32> to vector<1x128xf32>
    %49 = vector.broadcast %47 : vector<32x1xf32> to vector<32x128xf32>
    %50 = vector.broadcast %48 : vector<1x128xf32> to vector<32x128xf32>
    %51 = arith.mulf %49, %50 : vector<32x128xf32>
    %52 = arith.addf %46, %51 : vector<32x128xf32>
    %53 = math.tanh %52 : vector<32x128xf32>
    %c1_20 = arith.constant 1 : index
    %c0_21 = arith.constant 0 : index
    %c0_22 = arith.constant 0 : index
    %54 = vector.load %arg3[%c1_20, %c0_21, %c0_22] : memref<4x4x33xf32, #tpu.memory_space<vmem>>, vector<1x4x32xf32>
    %55 = vector.shape_cast %54 : vector<1x4x32xf32> to vector<4x32xf32>
    %c1_23 = arith.constant 1 : index
    %c0_24 = arith.constant 0 : index
    %c32_25 = arith.constant 32 : index
    %56 = vector.load %arg3[%c1_23, %c0_24, %c32_25] : memref<4x4x33xf32, #tpu.memory_space<vmem>>, vector<1x4x1xf32>
    %57 = vector.shape_cast %56 : vector<1x4x1xf32> to vector<4x1xf32>
    %cst_26 = arith.constant dense<0.000000e+00> : vector<4x128xf32>
    %58 = tpu.matmul %55, %53, %cst_26 {dimension_numbers = #tpu.dot_dimension_numbers<[1], [0], [0], [1], [0, 0, 1, 1], [], []>} : vector<4x32xf32>, vector<32x128xf32>, vector<4x128xf32> -> vector<4x128xf32>
    %59 = vector.broadcast %57 : vector<4x1xf32> to vector<4x128xf32>
    %60 = arith.addf %58, %59 : vector<4x128xf32>
    %61 = vector.extract_strided_slice %60 {offsets = [0, 0], sizes = [2, 128], strides = [1, 1]} : vector<4x128xf32> to vector<2x128xf32>
    %62 = vector.extract_strided_slice %60 {offsets = [2, 0], sizes = [2, 128], strides = [1, 1]} : vector<4x128xf32> to vector<2x128xf32>
    %63 = math.exp %61 : vector<2x128xf32>
    %64 = arith.mulf %0, %63 : vector<2x128xf32>
    %65 = arith.addf %64, %62 : vector<2x128xf32>
    %cst_27 = arith.constant dense<0.000000e+00> : vector<128xf32>
    %66 = vector.multi_reduction <add>, %61, %cst_27 [0] : vector<2x128xf32> to vector<128xf32>
    %67 = vector.shape_cast %66 : vector<128xf32> to vector<1x128xf32>
    %68 = arith.addf %35, %67 : vector<1x128xf32>
    %c2_28 = arith.constant 2 : index
    %c0_29 = arith.constant 0 : index
    %c0_30 = arith.constant 0 : index
    %69 = vector.load %arg2[%c2_28, %c0_29, %c0_30] : memref<4x32x3xf32, #tpu.memory_space<vmem>>, vector<1x32x2xf32>
    %70 = vector.shape_cast %69 : vector<1x32x2xf32> to vector<32x2xf32>
    %c2_31 = arith.constant 2 : index
    %c0_32 = arith.constant 0 : index
    %c2_33 = arith.constant 2 : index
    %71 = vector.load %arg2[%c2_31, %c0_32, %c2_33] : memref<4x32x3xf32, #tpu.memory_space<vmem>>, vector<1x32x1xf32>
    %72 = vector.shape_cast %71 : vector<1x32x1xf32> to vector<32x1xf32>
    %73 = vector.extract_strided_slice %70 {offsets = [0, 0], sizes = [32, 1], strides = [1, 1]} : vector<32x2xf32> to vector<32x1xf32>
    %74 = vector.extract_strided_slice %65 {offsets = [0, 0], sizes = [1, 128], strides = [1, 1]} : vector<2x128xf32> to vector<1x128xf32>
    %75 = vector.broadcast %73 : vector<32x1xf32> to vector<32x128xf32>
    %76 = vector.broadcast %74 : vector<1x128xf32> to vector<32x128xf32>
    %77 = arith.mulf %75, %76 : vector<32x128xf32>
    %78 = vector.broadcast %72 : vector<32x1xf32> to vector<32x128xf32>
    %79 = arith.addf %78, %77 : vector<32x128xf32>
    %80 = vector.extract_strided_slice %70 {offsets = [0, 1], sizes = [32, 1], strides = [1, 1]} : vector<32x2xf32> to vector<32x1xf32>
    %81 = vector.extract_strided_slice %65 {offsets = [1, 0], sizes = [1, 128], strides = [1, 1]} : vector<2x128xf32> to vector<1x128xf32>
    %82 = vector.broadcast %80 : vector<32x1xf32> to vector<32x128xf32>
    %83 = vector.broadcast %81 : vector<1x128xf32> to vector<32x128xf32>
    %84 = arith.mulf %82, %83 : vector<32x128xf32>
    %85 = arith.addf %79, %84 : vector<32x128xf32>
    %86 = math.tanh %85 : vector<32x128xf32>
    %c2_34 = arith.constant 2 : index
    %c0_35 = arith.constant 0 : index
    %c0_36 = arith.constant 0 : index
    %87 = vector.load %arg3[%c2_34, %c0_35, %c0_36] : memref<4x4x33xf32, #tpu.memory_space<vmem>>, vector<1x4x32xf32>
    %88 = vector.shape_cast %87 : vector<1x4x32xf32> to vector<4x32xf32>
    %c2_37 = arith.constant 2 : index
    %c0_38 = arith.constant 0 : index
    %c32_39 = arith.constant 32 : index
    %89 = vector.load %arg3[%c2_37, %c0_38, %c32_39] : memref<4x4x33xf32, #tpu.memory_space<vmem>>, vector<1x4x1xf32>
    %90 = vector.shape_cast %89 : vector<1x4x1xf32> to vector<4x1xf32>
    %cst_40 = arith.constant dense<0.000000e+00> : vector<4x128xf32>
    %91 = tpu.matmul %88, %86, %cst_40 {dimension_numbers = #tpu.dot_dimension_numbers<[1], [0], [0], [1], [0, 0, 1, 1], [], []>} : vector<4x32xf32>, vector<32x128xf32>, vector<4x128xf32> -> vector<4x128xf32>
    %92 = vector.broadcast %90 : vector<4x1xf32> to vector<4x128xf32>
    %93 = arith.addf %91, %92 : vector<4x128xf32>
    %94 = vector.extract_strided_slice %93 {offsets = [0, 0], sizes = [2, 128], strides = [1, 1]} : vector<4x128xf32> to vector<2x128xf32>
    %95 = vector.extract_strided_slice %93 {offsets = [2, 0], sizes = [2, 128], strides = [1, 1]} : vector<4x128xf32> to vector<2x128xf32>
    %96 = math.exp %94 : vector<2x128xf32>
    %97 = arith.mulf %32, %96 : vector<2x128xf32>
    %98 = arith.addf %97, %95 : vector<2x128xf32>
    %cst_41 = arith.constant dense<0.000000e+00> : vector<128xf32>
    %99 = vector.multi_reduction <add>, %94, %cst_41 [0] : vector<2x128xf32> to vector<128xf32>
    %100 = vector.shape_cast %99 : vector<128xf32> to vector<1x128xf32>
    %101 = arith.addf %68, %100 : vector<1x128xf32>
    %c3 = arith.constant 3 : index
    %c0_42 = arith.constant 0 : index
    %c0_43 = arith.constant 0 : index
    %102 = vector.load %arg2[%c3, %c0_42, %c0_43] : memref<4x32x3xf32, #tpu.memory_space<vmem>>, vector<1x32x2xf32>
    %103 = vector.shape_cast %102 : vector<1x32x2xf32> to vector<32x2xf32>
    %c3_44 = arith.constant 3 : index
    %c0_45 = arith.constant 0 : index
    %c2_46 = arith.constant 2 : index
    %104 = vector.load %arg2[%c3_44, %c0_45, %c2_46] : memref<4x32x3xf32, #tpu.memory_space<vmem>>, vector<1x32x1xf32>
    %105 = vector.shape_cast %104 : vector<1x32x1xf32> to vector<32x1xf32>
    %106 = vector.extract_strided_slice %103 {offsets = [0, 0], sizes = [32, 1], strides = [1, 1]} : vector<32x2xf32> to vector<32x1xf32>
    %107 = vector.extract_strided_slice %98 {offsets = [0, 0], sizes = [1, 128], strides = [1, 1]} : vector<2x128xf32> to vector<1x128xf32>
    %108 = vector.broadcast %106 : vector<32x1xf32> to vector<32x128xf32>
    %109 = vector.broadcast %107 : vector<1x128xf32> to vector<32x128xf32>
    %110 = arith.mulf %108, %109 : vector<32x128xf32>
    %111 = vector.broadcast %105 : vector<32x1xf32> to vector<32x128xf32>
    %112 = arith.addf %111, %110 : vector<32x128xf32>
    %113 = vector.extract_strided_slice %103 {offsets = [0, 1], sizes = [32, 1], strides = [1, 1]} : vector<32x2xf32> to vector<32x1xf32>
    %114 = vector.extract_strided_slice %98 {offsets = [1, 0], sizes = [1, 128], strides = [1, 1]} : vector<2x128xf32> to vector<1x128xf32>
    %115 = vector.broadcast %113 : vector<32x1xf32> to vector<32x128xf32>
    %116 = vector.broadcast %114 : vector<1x128xf32> to vector<32x128xf32>
    %117 = arith.mulf %115, %116 : vector<32x128xf32>
    %118 = arith.addf %112, %117 : vector<32x128xf32>
    %119 = math.tanh %118 : vector<32x128xf32>
    %c3_47 = arith.constant 3 : index
    %c0_48 = arith.constant 0 : index
    %c0_49 = arith.constant 0 : index
    %120 = vector.load %arg3[%c3_47, %c0_48, %c0_49] : memref<4x4x33xf32, #tpu.memory_space<vmem>>, vector<1x4x32xf32>
    %121 = vector.shape_cast %120 : vector<1x4x32xf32> to vector<4x32xf32>
    %c3_50 = arith.constant 3 : index
    %c0_51 = arith.constant 0 : index
    %c32_52 = arith.constant 32 : index
    %122 = vector.load %arg3[%c3_50, %c0_51, %c32_52] : memref<4x4x33xf32, #tpu.memory_space<vmem>>, vector<1x4x1xf32>
    %123 = vector.shape_cast %122 : vector<1x4x1xf32> to vector<4x1xf32>
    %cst_53 = arith.constant dense<0.000000e+00> : vector<4x128xf32>
    %124 = tpu.matmul %121, %119, %cst_53 {dimension_numbers = #tpu.dot_dimension_numbers<[1], [0], [0], [1], [0, 0, 1, 1], [], []>} : vector<4x32xf32>, vector<32x128xf32>, vector<4x128xf32> -> vector<4x128xf32>
    %125 = vector.broadcast %123 : vector<4x1xf32> to vector<4x128xf32>
    %126 = arith.addf %124, %125 : vector<4x128xf32>
    %127 = vector.extract_strided_slice %126 {offsets = [0, 0], sizes = [2, 128], strides = [1, 1]} : vector<4x128xf32> to vector<2x128xf32>
    %128 = vector.extract_strided_slice %126 {offsets = [2, 0], sizes = [2, 128], strides = [1, 1]} : vector<4x128xf32> to vector<2x128xf32>
    %129 = math.exp %127 : vector<2x128xf32>
    %130 = arith.mulf %65, %129 : vector<2x128xf32>
    %131 = arith.addf %130, %128 : vector<2x128xf32>
    %cst_54 = arith.constant dense<0.000000e+00> : vector<128xf32>
    %132 = vector.multi_reduction <add>, %127, %cst_54 [0] : vector<2x128xf32> to vector<128xf32>
    %133 = vector.shape_cast %132 : vector<128xf32> to vector<1x128xf32>
    %134 = arith.addf %101, %133 : vector<1x128xf32>
    %135 = arith.mulf %131, %131 : vector<2x128xf32>
    %136 = arith.mulf %98, %98 : vector<2x128xf32>
    %137 = arith.addf %135, %136 : vector<2x128xf32>
    %cst_55 = arith.constant dense<0.000000e+00> : vector<128xf32>
    %138 = vector.multi_reduction <add>, %137, %cst_55 [0] : vector<2x128xf32> to vector<128xf32>
    %139 = vector.shape_cast %138 : vector<128xf32> to vector<1x128xf32>
    %cst_56 = arith.constant -5.000000e-01 : f32
    %140 = vector.broadcast %cst_56 : f32 to vector<1x128xf32>
    %141 = arith.mulf %140, %139 : vector<1x128xf32>
    %cst_57 = arith.constant 5.000000e-01 : f32
    %cst_58 = arith.constant 4.000000e+00 : f32
    %142 = arith.mulf %cst_57, %cst_58 : f32
    %cst_59 = arith.constant 1.83787704 : f32
    %143 = arith.mulf %142, %cst_59 : f32
    %144 = vector.broadcast %143 : f32 to vector<1x128xf32>
    %145 = arith.subf %141, %144 : vector<1x128xf32>
    %146 = tpu.concatenate %131, %98, %145, %134 in 0 : vector<2x128xf32>, vector<2x128xf32>, vector<1x128xf32>, vector<1x128xf32> -> vector<6x128xf32>
    %c0_60 = arith.constant 0 : index
    %c0_61 = arith.constant 0 : index
    %147 = vector.load %arg4[%c0_60, %c0_61] : memref<6x128xf32, #tpu.memory_space<vmem>>, vector<6x128xf32>
    tpu.vector_store %arg4[%c0_60, %c0_61], %146 {strides = array<i32>} : memref<6x128xf32, #tpu.memory_space<vmem>>, vector<6x128xf32>,
    return
  }
  func.func @transform_0(%arg0: i32) -> (i32, i32) {
    %c0_i32 = arith.constant 0 : i32
    %c0_i32_0 = arith.constant 0 : i32
    return %c0_i32, %arg0 : i32, i32
  }
  func.func @transform_1(%arg0: i32) -> (i32, i32, i32) {
    %c0_i32 = arith.constant 0 : i32
    %c0_i32_0 = arith.constant 0 : i32
    %c0_i32_1 = arith.constant 0 : i32
    %c0_i32_2 = arith.constant 0 : i32
    return %c0_i32, %c0_i32_0, %c0_i32_1 : i32, i32, i32
  }
  func.func @transform_2(%arg0: i32) -> (i32, i32, i32) {
    %c0_i32 = arith.constant 0 : i32
    %c0_i32_0 = arith.constant 0 : i32
    %c0_i32_1 = arith.constant 0 : i32
    %c0_i32_2 = arith.constant 0 : i32
    return %c0_i32, %c0_i32_0, %c0_i32_1 : i32, i32, i32
  }
  func.func @transform_3(%arg0: i32) -> (i32, i32) {
    %c0_i32 = arith.constant 0 : i32
    %c0_i32_0 = arith.constant 0 : i32
    return %c0_i32, %arg0 : i32, i32
  }
}

</mosaic_0001>

<bundles_post_ra>
// kernel: normalizing_flow_forward.1
= control target key start
LH: loop header
LB: loop body
LE: loop exit
PB: predicated region body
PF: predicated region fallthrough
CT: control target
= control target key end

     0   :  { %v948_v0 = vmov 2   ;;  %v949_v1 = vmov 0   ;;  %v950_v5 = vmov 1   ;;  %v951_v7 = vmov 0.0|0.0   ;;  %s1157_s1 = inlined_call_operand.vmem [shape: f32[4,32,3], index: 1, kind: input, shape index: {}]   ;;  %s1158_s2 = inlined_call_operand.vmem [shape: f32[4,4,33], index: 2, kind: input, shape index: {}]   ;;  %s1159_s0 = inlined_call_operand.vmem [shape: f32[4,128], index: 0, kind: input, shape index: {}]   ;;  %s1160_s3 = inlined_call_operand.vmem [shape: f32[6,128], index: 3, kind: output, shape index: {}]  }
   0x1   :  { %873 = vset.pattern.permute.xlu1 %v948_v0  ;;  %872 = vset.pattern.permute.xlu0 %v949_v1  ;;  %v16_v2 = vld [vmem:[%s1157_s1] sm:$0xff]  ;;  %v17_v3 = vld [vmem:[%s1157_s1 + $0x8] sm:$0xff]  ;;  %v19_v4 = vld [vmem:[%s1157_s1 + $0x18] sm:$0xff]  ;;  %vm952_vm0 = vmmov 0   ;;  %v953_v8 = vmov 0.0   ;;  %v954_v11 = vmov 32   ;;  %v40_v15 = vlaneseq }
   0x2   :  { %49 = vperm.xlu1 %873, %v16_v2   ;;  %22 = vperm.xlu0 %872, %v16_v2   ;;  %v18_v6 = vld [vmem:[%s1157_s1 + $0x10] sm:$0xff]  ;;  %v758_v9 = vld [vmem:[%s1157_s1 + $0x20] sm:$0xff]  ;;  %v759_v12 = vld [vmem:[%s1157_s1 + $0x28] sm:$0xff]  ;;  %vm106_vm1 = vcmask 261120   ;;  %vm186_vm2 = vcmask 1041408   ;;  %vm748_vm3 = vcmask 1043456  }
   0x3   :  { %841 = vmatprep.subr.bf16.mxu0 %v951_v7  ;;  %847 = vmatprep.subr.bf16.mxu1 %v951_v7  ;;  %v1007_v10 = vld [vmem:[%s1158_s2] sm:$0xf]  ;;  %v760_v13 = vld [vmem:[%s1157_s1 + $0x30] sm:$0xff]  ;;  %v761_v14 = vld [vmem:[%s1157_s1 + $0x38] sm:$0xff]  ;;  %v41_v16 = vshrl.u32 %v40_v15, 7  ;;  %vm750_vm4 = vcmask 1044480  }
   0x4   :  { %805 = vmatprep.mubr.msk.f32.mxu0 %vm952_vm0, %v953_v8  ;;  %816 = vmatprep.mubr.msk.f32.mxu1 %vm952_vm0, %v953_v8  ;;  %v1034_v20 = vld [vmem:[%s1159_s0] sm:$0x3]  ;;  %v1051_v56 = vld [vmem:[%s1158_s2 + $0x4] sm:$0xf]  ;;  %v765_v58 = vld [vmem:[%s1157_s1 + $0x48] sm:$0xff] }
   0x5   :  { %v1029_v19 = vsub.s32 0, %v41_v16  ;;  %v1036_v21 = vsub.s32 1, %v41_v16  ;;  %v764_v57 = vld [vmem:[%s1157_s1 + $0x40] sm:$0xff]  ;;  %v766_v59 = vld [vmem:[%s1157_s1 + $0x50] sm:$0xff]  ;;  %v767_v60 = vld [vmem:[%s1157_s1 + $0x58] sm:$0xff] }
   0x6   :  { %53 = vperm.xlu1 %873, %v17_v3   ;;  %27 = vperm.xlu0 %872, %v17_v3   ;;  %v15_v16 = vld [vmem:[%s1159_s0 + $0x2] sm:$0x3] }
   0x7   :  { %v43_v24 = vrot.slane %v1034_v20, %v1029_v19  ;;  %v87_v25 = vrot.slane %v1034_v20, %v1036_v21 }
   0xa   :  { %874 = vset.pattern.permute.xlu1 %v950_v5  ;;  %37 = vperm.xlu0 %872, %v19_v4  }
   0xb   :  { %73 = vperm.xlu1 %874, %v17_v3  }
   0xe   :  { %876 = vset.pattern.permute.xlu0 %v950_v5 }
   0xf   :  { %875 = vset.pattern.permute.xlu1 %v949_v1  ;;  %69 = vperm.xlu0 %876, %v16_v2  }
  0x10   :  { %32 = vperm.xlu1 %875, %v18_v6  }
  0x13   :  { %77 = vperm.xlu0 %876, %v18_v6  }
  0x14   :  { %877 = vset.pattern.permute.xlu1 %v948_v0 }
  0x15   :  { %57 = vperm.xlu1 %877, %v18_v6  }
  0x17   :  { %880 = vset.pattern.permute.xlu0 %v949_v1 }
  0x18   :  { %202 = vperm.xlu0 %880, %v758_v9  }
  0x19   :  { %61 = vperm.xlu1 %877, %v19_v4  }
  0x1c   :  { %212 = vperm.xlu0 %880, %v760_v13  }
  0x1d   :  { %878 = vset.pattern.permute.xlu1 %v950_v5 }
  0x1e   :  { %81 = vperm.xlu1 %878, %v19_v4  }
  0x20   :  { %884 = vset.pattern.permute.xlu0 %v948_v0 }
  0x21   :  { %233 = vperm.xlu0 %884, %v759_v12  }
  0x22   :  { %879 = vset.pattern.permute.xlu1 %v954_v11 }
  0x23   :  { %103 = vperm.xlu1 %879, %v1007_v10  }
  0x25   :  { %241 = vperm.xlu0 %884, %v761_v14  }
  0x27   :  { %881 = vset.pattern.permute.xlu1 %v949_v1 }
  0x28   :  { %207 = vperm.xlu1 %881, %v759_v12  }
  0x29   :  { %888 = vset.pattern.permute.xlu0 %v954_v11 }
  0x2a   :  { %284 = vperm.xlu0 %888, %v1051_v56  }
  0x2c   :  { %882 = vset.pattern.permute.xlu1 %v948_v0 }
  0x2d   :  { %229 = vperm.xlu1 %882, %v758_v9  }
  0x2e   :  { %890 = vset.pattern.permute.xlu0 %v948_v0 }
  0x2f   :  { %408 = vperm.xlu0 %890, %v764_v57  }
  0x31   :  { %883 = vset.pattern.permute.xlu1 %v950_v5 }
  0x32   :  { %249 = vperm.xlu1 %883, %v758_v9  }
  0x33   :  { %416 = vperm.xlu0 %890, %v766_v59  }
  0x36   :  { %253 = vperm.xlu1 %883, %v759_v12  }
  0x37   :  { %894 = vset.pattern.permute.xlu0 %v950_v5 }
  0x38   :  { %432 = vperm.xlu0 %894, %v765_v58  }
  0x3a   :  { %885 = vset.pattern.permute.xlu1 %v949_v1 }
  0x3b   :  { %217 = vperm.xlu1 %885, %v761_v14  }
  0x3c   :  { %440 = vperm.xlu0 %894, %v767_v60  }
  0x3f   :  { %886 = vset.pattern.permute.xlu1 %v948_v0 }
  0x40   :  { %237 = vperm.xlu1 %886, %v760_v13   ;;  %899 = vset.pattern.permute.xlu0 %v949_v1 }
  0x44   :  { %887 = vset.pattern.permute.xlu1 %v950_v5 }
  0x45   :  { %257 = vperm.xlu1 %887, %v760_v13  }
  0x49   :  { %261 = vperm.xlu1 %887, %v761_v14  }
  0x4d   :  { %889 = vset.pattern.permute.xlu1 %v949_v1 }
  0x4e   :  { %381 = vperm.xlu1 %889, %v764_v57  }
  0x52   :  { %386 = vperm.xlu1 %889, %v765_v58  }
  0x56   :  { %891 = vset.pattern.permute.xlu1 %v948_v0 }
  0x57   :  { %412 = vperm.xlu1 %891, %v765_v58  }
  0x5b   :  { %892 = vset.pattern.permute.xlu1 %v950_v5 }
  0x5c   :  { %428 = vperm.xlu1 %892, %v764_v57  }
  0x60   :  { %893 = vset.pattern.permute.xlu1 %v949_v1 }
  0x61   :  { %391 = vperm.xlu1 %893, %v766_v59  }
  0x65   :  { %396 = vperm.xlu1 %893, %v767_v60  }
  0x69   :  { %895 = vset.pattern.permute.xlu1 %v948_v0 }
  0x6a   :  { %420 = vperm.xlu1 %895, %v767_v60  }
  0x6e   :  { %896 = vset.pattern.permute.xlu1 %v950_v5 }
  0x6f   :  { %436 = vperm.xlu1 %896, %v766_v59  }
  0x73   :  { %897 = vset.pattern.permute.xlu1 %v954_v11 }
  0x81   :  { %v50_v17 = vpop.permute.xlu1 %49  ;;  %v23_v18 = vpop.permute.xlu0 %22 }
  0x82   :  { %v44_v29 = vmul.f32 %v43_v24, %v23_v18 }
  0x84   :  { %v64_v34 = vadd.f32 %v50_v17, %v44_v29 }
  0x85   :  { %v54_v22 = vpop.permute.xlu1 %53  ;;  %v28_v23 = vpop.permute.xlu0 %27 }
  0x86   :  { %v45_v26 = vmul.f32 %v43_v24, %v28_v23 }
  0x88   :  { %v65_v31 = vadd.f32 %v54_v22, %v45_v26 }
  0x89   :  { %v38_v27 = vpop.permute.xlu0 %37 }
  0x8a   :  { %v74_v28 = vpop.permute.xlu1 %73  ;;  %v47_v45 = vmul.f32 %v43_v24, %v38_v27 }
  0x8b   :  { %v89_v30 = vmul.f32 %v87_v25, %v74_v28 }
  0x8d   :  { %v93_v32 = vadd.f32 %v89_v30, %v65_v31 }
  0x8e   :  { %v70_v33 = vpop.permute.xlu0 %69 }
  0x8f   :  { %v88_v35 = vmul.f32 %v87_v25, %v70_v33  ;;  %v33_v36 = vpop.permute.xlu1 %32  ;;  %908 = vtanh.f32 %v93_v32 }
  0x90   :  { %v46_v40 = vmul.f32 %v43_v24, %v33_v36 }
  0x91   :  { %v92_v37 = vadd.f32 %v88_v35, %v64_v34 }
  0x92   :  { %v78_v39 = vpop.permute.xlu0 %77 }
  0x93   :  { %910 = vtanh.f32 %v92_v37  ;;  %v90_v43 = vmul.f32 %v87_v25, %v78_v39 }
  0x94   :  { %v58_v38 = vpop.permute.xlu1 %57 }
  0x95   :  { %v66_v42 = vadd.f32 %v58_v38, %v46_v40 }
  0x97   :  { %v94_v47 = vadd.f32 %v90_v43, %v66_v42  ;;  %v203_v12 = vpop.permute.xlu0 %202 }
  0x98   :  { %v62_v41 = vpop.permute.xlu1 %61 }
  0x99   :  { %v909_v44 = vpop.eup %908  ;;  %v67_v49 = vadd.f32 %v62_v41, %v47_v45  ;;  %912 = vtanh.f32 %v94_v47 }
  0x9b   :  { %v213_v14 = vpop.permute.xlu0 %212 }
  0x9d   :  { %v911_v46 = vpop.eup %910  ;;  %v82_v48 = vpop.permute.xlu1 %81 }
  0x9e   :  { %v91_v50 = vmul.f32 %v87_v25, %v82_v48  ;;  %v842_v51 = vpack.c.bf16 %v909_v44, %v911_v46 }
  0xa0   :  { %v95_v52 = vadd.f32 %v91_v50, %v67_v49  ;;  %843 = vmatpush3.bf16.msra.mxu0 %v842_v51  ;;  %v234_v18 = vpop.permute.xlu0 %233 }
  0xa1   :  { %844 = vmatprep.subr.bf16.mxu0 %v951_v7 }
  0xa2   :  { %914 = vtanh.f32 %v95_v52  ;;  %v104_v61 = vpop.permute.xlu1 %103  ;;  %v1097_v52 = vld [vmem:[%s1158_s2 + $0x8] sm:$0xf] }
  0xa3   :  { %v913_v53 = vpop.eup %912  ;;  %463 = vperm.xlu1 %897, %v1097_v52  }
  0xa4   :  { %v242_v28 = vpop.permute.xlu0 %241 }
  0xa7   :  { %v208_v62 = vpop.permute.xlu1 %207  ;;  %898 = vset.pattern.permute.xlu1 %v949_v1 }
  0xac   :  { %v915_v54 = vpop.eup %914  ;;  %v230_v63 = vpop.permute.xlu1 %229 }
  0xad   :  { %v845_v55 = vpack.c.bf16 %v915_v54, %v913_v53  ;;  %v770_v53 = vld [vmem:[%s1157_s1 + $0x60] sm:$0xff]  ;;  %v771_v54 = vld [vmem:[%s1157_s1 + $0x68] sm:$0xff] }
  0xae   :  { %565 = vperm.xlu0 %899, %v771_v54   ;;  %560 = vperm.xlu1 %898, %v770_v53  }
  0xaf   :  { %846 = vmatpush3.bf16.msra.mxu0 %v845_v55  ;;  %v772_v55 = vld [vmem:[%s1157_s1 + $0x70] sm:$0xff] }
  0xb0   :  { %853 = vmatprep.subr.bf16.mxu0 %v951_v7 }
  0xb1   :  { %v250_v2 = vpop.permute.xlu1 %249 }
  0xb2   :  { %806 = vmatmul.mubr.msk.f32.vlgmr.msra.gmra.mrb[0].mxu0 %vm106_vm1, %v1007_v10  ;;  %900 = vset.pattern.permute.xlu1 %v948_v0 }
  0xb3   :  { %827 = vmatprep.mubr.msk.f32.mxu0 %vm952_vm0, %v953_v8  ;;  %587 = vperm.xlu1 %900, %v770_v53  }
  0xb5   :  { %v254_v3 = vpop.permute.xlu1 %253 }
  0xb7   :  { %591 = vperm.xlu1 %900, %v771_v54  }
  0xba   :  { %v218_v13 = vpop.permute.xlu1 %217 }
  0xbb   :  { %901 = vset.pattern.permute.xlu1 %v950_v5 }
  0xbc   :  { %611 = vperm.xlu1 %901, %v771_v54  }
  0xbf   :  { %v238_v15 = vpop.permute.xlu1 %237 }
  0xc0   :  { %902 = vset.pattern.permute.xlu1 %v949_v1 }
  0xc1   :  { %570 = vperm.xlu1 %902, %v772_v55  }
  0xc4   :  { %v258_v24 = vpop.permute.xlu1 %257 }
  0xc5   :  { %904 = vset.pattern.permute.xlu1 %v948_v0 }
  0xc6   :  { %595 = vperm.xlu1 %904, %v772_v55  }
  0xc8   :  { %v262_v33 = vpop.permute.xlu1 %261 }
 0x185   :  { %v175_v4 = vpop.f32.mrb[0].mxu0 }
 0x186   :  { %v1075_v6 = vadd.f32 %v175_v4, %v104_v61  ;;  %v807_v9 = vpop.f32.mrb[1].mxu0 }
 0x188   :  { %v179_v10 = vmul.f32 1.442695, %v1075_v6  ;;  %v183_v23 = vrot.slane %v1075_v6, 2  ;;  %v187_v58 = vsel %vm186_vm2, %v1075_v6, 0.0 }
 0x189   :  { %v188_v60 = vrot.slane %v187_v58, 4 }
 0x18a   :  { %916 = vpow2.f32 %v179_v10 }
 0x18b   :  { %v189_v1 = vadd.f32 %v188_v60, %v187_v58 }
 0x194   :  { %v917_v17 = vpop.eup %916 }
 0x195   :  { %v181_v22 = vmul.f32 %v917_v17, %v15_v16 }
 0x197   :  { %v1082_v25 = vadd.f32 %v183_v23, %v181_v22 }
 0x199   :  { %v267_v26 = vrot.slane %v1082_v25, %v1036_v21  ;;  %v223_v27 = vrot.slane %v1082_v25, %v1029_v19 }
 0x19b   :  { %v227_v29 = vmul.f32 %v223_v27, %v218_v13  ;;  %v224_v30 = vmul.f32 %v223_v27, %v203_v12  ;;  %v226_v31 = vmul.f32 %v223_v27, %v213_v14  ;;  %v225_v32 = vmul.f32 %v223_v27, %v208_v62  ;;  %v285_v62 = vpop.permute.xlu0 %284 }
 0x19c   :  { %v268_v35 = vmul.f32 %v267_v26, %v250_v2  ;;  %v269_v37 = vmul.f32 %v267_v26, %v254_v3  ;;  %v270_v39 = vmul.f32 %v267_v26, %v258_v24  ;;  %v271_v42 = vmul.f32 %v267_v26, %v262_v33 }
 0x19d   :  { %v244_v34 = vadd.f32 %v230_v63, %v224_v30  ;;  %v247_v36 = vadd.f32 %v242_v28, %v227_v29  ;;  %v246_v38 = vadd.f32 %v238_v15, %v226_v31  ;;  %v245_v40 = vadd.f32 %v234_v18, %v225_v32 }
 0x19e   :  { %v190_v3 = vrot.slane %v189_v1, 2 }
 0x19f   :  { %v272_v41 = vadd.f32 %v268_v35, %v244_v34  ;;  %v274_v43 = vadd.f32 %v270_v39, %v246_v38  ;;  %v273_v44 = vadd.f32 %v269_v37, %v245_v40  ;;  %v275_v45 = vadd.f32 %v271_v42, %v247_v36  ;;  %v409_v10 = vpop.permute.xlu0 %408 }
 0x1a0   :  { %v191_v12 = vadd.f32 %v190_v3, %v189_v1 }
 0x1a1   :  { %918 = vtanh.f32 %v272_v41 }
 0x1a2   :  { %920 = vtanh.f32 %v273_v44  ;;  %v192_v15 = vrot.slane %v191_v12, 1 }
 0x1a3   :  { %922 = vtanh.f32 %v274_v43  ;;  %v417_v17 = vpop.permute.xlu0 %416 }
 0x1a4   :  { %924 = vtanh.f32 %v275_v45  ;;  %v193_v22 = vadd.f32 %v192_v15, %v191_v12 }
 0x1a7   :  { %v433_v30 = vpop.permute.xlu0 %432 }
 0x1ab   :  { %v919_v46 = vpop.eup %918  ;;  %v441_v38 = vpop.permute.xlu0 %440 }
 0x1ac   :  { %v921_v47 = vpop.eup %920 }
 0x1ad   :  { %v923_v48 = vpop.eup %922  ;;  %v848_v49 = vpack.c.bf16 %v921_v47, %v919_v46 }
 0x1ae   :  { %v925_v50 = vpop.eup %924 }
 0x1af   :  { %849 = vmatpush3.bf16.msra.mxu1 %v848_v49  ;;  %v851_v51 = vpack.c.bf16 %v925_v50, %v923_v48 }
 0x1b0   :  { %850 = vmatprep.subr.bf16.mxu1 %v951_v7 }
 0x1b3   :  { %852 = vmatpush3.bf16.msra.mxu1 %v851_v51 }
 0x1b4   :  { %859 = vmatprep.subr.bf16.mxu1 %v951_v7 }
 0x1b6   :  { %817 = vmatmul.mubr.msk.f32.vlgmr.msra.gmra.mrb[0].mxu1 %vm106_vm1, %v1051_v56  ;;  %v382_v56 = vpop.permute.xlu1 %381 }
 0x1b7   :  { %838 = vmatprep.mubr.msk.f32.mxu1 %vm952_vm0, %v953_v8  ;;  %v773_v8 = vld [vmem:[%s1157_s1 + $0x78] sm:$0xff] }
 0x1b8   :  { %575 = vperm.xlu0 %899, %v773_v8   ;;  %599 = vperm.xlu1 %904, %v773_v8  }
 0x1ba   :  { %v387_v57 = vpop.permute.xlu1 %386 }
 0x1bc   :  { %903 = vset.pattern.permute.xlu0 %v950_v5  ;;  %905 = vset.pattern.permute.xlu1 %v950_v5 }
 0x1bd   :  { %607 = vperm.xlu0 %903, %v770_v53   ;;  %619 = vperm.xlu1 %905, %v773_v8  }
 0x1be   :  { %v413_v59 = vpop.permute.xlu1 %412 }
 0x1c1   :  { %615 = vperm.xlu0 %903, %v772_v55   ;;  %906 = vset.pattern.permute.xlu1 %v954_v11 }
 0x1c2   :  { %v429_v61 = vpop.permute.xlu1 %428 }
 0x1c5   :  { %907 = vset.pattern.permute.xlu0 %v954_v11 }
 0x1c6   :  { %v392_v9 = vpop.permute.xlu1 %391 }
 0x1ca   :  { %v397_v6 = vpop.permute.xlu1 %396 }
 0x1ce   :  { %v421_v26 = vpop.permute.xlu1 %420 }
 0x1d2   :  { %v437_v34 = vpop.permute.xlu1 %436 }
 0x1d6   :  { %v464_v58 = vpop.permute.xlu1 %463 }
 0x289   :  { %v355_v63 = vpop.f32.mrb[0].mxu1 }
 0x28a   :  { %v356_v0 = vadd.f32 %v355_v63, %v285_v62  ;;  %v818_v2 = vpop.f32.mrb[1].mxu1 }
 0x28c   :  { %v359_v4 = vmul.f32 1.442695, %v356_v0  ;;  %v366_v5 = vsel %vm186_vm2, %v356_v0, 0.0  ;;  %v363_v28 = vrot.slane %v356_v0, 2 }
 0x28d   :  { %v367_v11 = vrot.slane %v366_v5, 4 }
 0x28e   :  { %926 = vpow2.f32 %v359_v4 }
 0x28f   :  { %v368_v13 = vadd.f32 %v367_v11, %v366_v5  ;;  %v566_v5 = vpop.permute.xlu0 %565 }
 0x291   :  { %v369_v14 = vrot.slane %v368_v13, 2 }
 0x293   :  { %v370_v16 = vadd.f32 %v369_v14, %v368_v13  ;;  %v576_v13 = vpop.permute.xlu0 %575 }
 0x295   :  { %v371_v18 = vrot.slane %v370_v16, 1 }
 0x297   :  { %v372_v23 = vadd.f32 %v371_v18, %v370_v16 }
 0x298   :  { %v927_v24 = vpop.eup %926 }
 0x299   :  { %v361_v27 = vmul.f32 %v927_v24, %v1034_v20  ;;  %v1125_v29 = vadd.f32 %v372_v23, %v193_v22  ;;  %v608_v23 = vpop.permute.xlu0 %607 }
 0x29b   :  { %v1127_v31 = vadd.f32 %v363_v28, %v361_v27 }
 0x29d   :  { %v402_v32 = vrot.slane %v1127_v31, %v1029_v19  ;;  %v446_v33 = vrot.slane %v1127_v31, %v1036_v21 }
 0x29f   :  { %v404_v35 = vmul.f32 %v402_v32, %v387_v57  ;;  %v405_v36 = vmul.f32 %v402_v32, %v392_v9  ;;  %v403_v37 = vmul.f32 %v402_v32, %v382_v56  ;;  %v447_v39 = vmul.f32 %v446_v33, %v429_v61  ;;  %v1139_v57 = vld [vmem:[%s1158_s2 + $0xc] sm:$0xf] }
 0x2a0   :  { %v406_v40 = vmul.f32 %v402_v32, %v397_v6  ;;  %v448_v20 = vmul.f32 %v446_v33, %v433_v30  ;;  %v449_v44 = vmul.f32 %v446_v33, %v437_v34  ;;  %v450_v46 = vmul.f32 %v446_v33, %v441_v38  ;;  %642 = vperm.xlu1 %906, %v1139_v57   ;;  %v616_v34 = vpop.permute.xlu0 %615 }
 0x2a1   :  { %v424_v41 = vadd.f32 %v413_v59, %v404_v35  ;;  %v423_v42 = vadd.f32 %v409_v10, %v403_v37  ;;  %v425_v43 = vadd.f32 %v417_v17, %v405_v36  ;;  %v561_v59 = vpop.permute.xlu1 %560 }
 0x2a2   :  { %v426_v45 = vadd.f32 %v421_v26, %v406_v40 }
 0x2a3   :  { %v451_v47 = vadd.f32 %v447_v39, %v423_v42  ;;  %v452_v48 = vadd.f32 %v448_v20, %v424_v41  ;;  %v453_v49 = vadd.f32 %v449_v44, %v425_v43 }
 0x2a4   :  { %v454_v50 = vadd.f32 %v450_v46, %v426_v45 }
 0x2a5   :  { %928 = vtanh.f32 %v451_v47  ;;  %v588_v60 = vpop.permute.xlu1 %587 }
 0x2a6   :  { %930 = vtanh.f32 %v452_v48 }
 0x2a7   :  { %932 = vtanh.f32 %v453_v49 }
 0x2a8   :  { %934 = vtanh.f32 %v454_v50 }
 0x2a9   :  { %v592_v61 = vpop.permute.xlu1 %591 }
 0x2ad   :  { %v612_v1 = vpop.permute.xlu1 %611 }
 0x2af   :  { %v929_v51 = vpop.eup %928 }
 0x2b0   :  { %v931_v53 = vpop.eup %930 }
 0x2b1   :  { %v933_v54 = vpop.eup %932  ;;  %v854_v8 = vpack.c.bf16 %v931_v53, %v929_v51  ;;  %v571_v4 = vpop.permute.xlu1 %570 }
 0x2b2   :  { %v935_v55 = vpop.eup %934 }
 0x2b3   :  { %855 = vmatpush3.bf16.msra.mxu0 %v854_v8  ;;  %v857_v56 = vpack.c.bf16 %v935_v55, %v933_v54 }
 0x2b4   :  { %856 = vmatprep.subr.bf16.mxu0 %v951_v7 }
 0x2b5   :  { %v596_v10 = vpop.permute.xlu1 %595 }
 0x2b7   :  { %858 = vmatpush3.bf16.msra.mxu0 %v857_v56 }
 0x2b9   :  { %v600_v16 = vpop.permute.xlu1 %599 }
 0x2ba   :  { %828 = vmatmul.mubr.msk.f32.vlgmr.msra.gmra.mrb[2].mxu0 %vm106_vm1, %v1097_v52 }
 0x2bd   :  { %v620_v28 = vpop.permute.xlu1 %619 }
 0x31f   :  { %v643_v49 = vpop.permute.xlu1 %642 }
 0x38d   :  { %v534_v62 = vpop.f32.mrb[2].mxu0 }
 0x38e   :  { %v535_v63 = vadd.f32 %v534_v62, %v464_v58  ;;  %v829_v0 = vpop.f32.mrb[3].mxu0 }
 0x390   :  { %v538_v2 = vmul.f32 1.442695, %v535_v63  ;;  %v545_v3 = vsel %vm186_vm2, %v535_v63, 0.0  ;;  %v542_v18 = vrot.slane %v535_v63, 2 }
 0x391   :  { %v546_v52 = vrot.slane %v545_v3, 4 }
 0x392   :  { %936 = vpow2.f32 %v538_v2 }
 0x393   :  { %v547_v9 = vadd.f32 %v546_v52, %v545_v3 }
 0x395   :  { %v548_v11 = vrot.slane %v547_v9, 2 }
 0x397   :  { %v549_v12 = vadd.f32 %v548_v11, %v547_v9 }
 0x399   :  { %v550_v14 = vrot.slane %v549_v12, 1 }
 0x39b   :  { %v551_v6 = vadd.f32 %v550_v14, %v549_v12 }
 0x39c   :  { %v937_v15 = vpop.eup %936 }
 0x39d   :  { %v540_v17 = vmul.f32 %v937_v15, %v1082_v25  ;;  %v552_v22 = vadd.f32 %v551_v6, %v1125_v29 }
 0x39f   :  { %v544_v24 = vadd.f32 %v542_v18, %v540_v17 }
 0x3a1   :  { %v625_v26 = vrot.slane %v544_v24, %v1036_v21  ;;  %v581_v27 = vrot.slane %v544_v24, %v1029_v19  ;;  %v733_v3 = vmul.f32 %v544_v24, %v544_v24 }
 0x3a3   :  { %v584_v30 = vmul.f32 %v581_v27, %v571_v4  ;;  %v583_v32 = vmul.f32 %v581_v27, %v566_v5  ;;  %v585_v33 = vmul.f32 %v581_v27, %v576_v13  ;;  %v627_v35 = vmul.f32 %v625_v26, %v612_v1 }
 0x3a4   :  { %v582_v36 = vmul.f32 %v581_v27, %v561_v59  ;;  %v629_v25 = vmul.f32 %v625_v26, %v620_v28  ;;  %v626_v20 = vmul.f32 %v625_v26, %v608_v23  ;;  %v628_v29 = vmul.f32 %v625_v26, %v616_v34 }
 0x3a5   :  { %v603_v37 = vadd.f32 %v592_v61, %v583_v32  ;;  %v604_v38 = vadd.f32 %v596_v10, %v584_v30  ;;  %v605_v39 = vadd.f32 %v600_v16, %v585_v33 }
 0x3a6   :  { %v602_v40 = vadd.f32 %v588_v60, %v582_v36 }
 0x3a7   :  { %v631_v41 = vadd.f32 %v627_v35, %v603_v37  ;;  %v633_v42 = vadd.f32 %v629_v25, %v605_v39  ;;  %v632_v21 = vadd.f32 %v628_v29, %v604_v38 }
 0x3a8   :  { %v630_v43 = vadd.f32 %v626_v20, %v602_v40 }
 0x3a9   :  { %938 = vtanh.f32 %v631_v41 }
 0x3aa   :  { %940 = vtanh.f32 %v630_v43 }
 0x3ab   :  { %942 = vtanh.f32 %v633_v42 }
 0x3ac   :  { %944 = vtanh.f32 %v632_v21 }
 0x3b3   :  { %v939_v19 = vpop.eup %938 }
 0x3b4   :  { %v941_v44 = vpop.eup %940 }
 0x3b5   :  { %v943_v45 = vpop.eup %942  ;;  %v860_v46 = vpack.c.bf16 %v939_v19, %v941_v44 }
 0x3b6   :  { %v945_v47 = vpop.eup %944 }
 0x3b7   :  { %861 = vmatpush3.bf16.msra.mxu1 %v860_v46  ;;  %v863_v48 = vpack.c.bf16 %v943_v45, %v945_v47 }
 0x3b8   :  { %862 = vmatprep.subr.bf16.mxu1 %v951_v7 }
 0x3bb   :  { %864 = vmatpush3.bf16.msra.mxu1 %v863_v48 }
 0x3be   :  { %839 = vmatmul.mubr.msk.f32.vlgmr.msra.gmra.mrb[2].mxu1 %vm106_vm1, %v1139_v57  ;;  %v745_v57 = vrot.slane %v544_v24, 6 }
 0x491   :  { %v713_v50 = vpop.f32.mrb[2].mxu1 }
 0x492   :  { %v714_v51 = vadd.f32 %v713_v50, %v643_v49  ;;  %v840_v53 = vpop.f32.mrb[3].mxu1 }
 0x494   :  { %v717_v54 = vmul.f32 1.442695, %v714_v51  ;;  %v724_v8 = vsel %vm186_vm2, %v714_v51, 0.0  ;;  %v721_v62 = vrot.slane %v714_v51, 2 }
 0x495   :  { %v725_v55 = vrot.slane %v724_v8, 4 }
 0x496   :  { %946 = vpow2.f32 %v717_v54 }
 0x497   :  { %v726_v56 = vadd.f32 %v725_v55, %v724_v8 }
 0x499   :  { %v727_v58 = vrot.slane %v726_v56, 2 }
 0x49b   :  { %v728_v59 = vadd.f32 %v727_v58, %v726_v56 }
 0x49d   :  { %v729_v60 = vrot.slane %v728_v59, 1 }
 0x49f   :  { %v730_v61 = vadd.f32 %v729_v60, %v728_v59 }
 0x4a0   :  { %v947_v7 = vpop.eup %946 }
 0x4a1   :  { %v719_v1 = vmul.f32 %v947_v7, %v1127_v31  ;;  %v731_v63 = vadd.f32 %v730_v61, %v552_v22 }
 0x4a3   :  { %v723_v0 = vadd.f32 %v721_v62, %v719_v1 }
 0x4a5   :  { %v732_v2 = vmul.f32 %v723_v0, %v723_v0  ;;  %v747_v4 = vsel %vm186_vm2, %v723_v0, %v745_v57 }
 0x4a7   :  { %v734_v52 = vadd.f32 %v733_v3, %v732_v2 }
 0x4a9   :  { %v735_v5 = vsel %vm186_vm2, %v734_v52, 0.0 }
 0x4aa   :  { %v736_v9 = vrot.slane %v735_v5, 4 }
 0x4ac   :  { %v737_v11 = vadd.f32 %v736_v9, %v735_v5 }
 0x4ae   :  { %v738_v10 = vrot.slane %v737_v11, 2 }
 0x4b0   :  { %v739_v12 = vadd.f32 %v738_v10, %v737_v11 }
 0x4b2   :  { %v740_v13 = vrot.slane %v739_v12, 1 }
 0x4b4   :  { %v741_v14 = vadd.f32 %v740_v13, %v739_v12 }
 0x4b6   :  { %v742_v6 = vmul.f32 -0.5, %v741_v14 }
 0x4b8   :  { %v776_v31 = vadd.f32 -3.675754, %v742_v6 }
 0x4ba   :  { %v749_v15 = vsel %vm748_vm3, %v747_v4, %v776_v31 }
 0x4bb   :  { %v751_v16 = vsel %vm750_vm4, %v749_v15, %v731_v63 }
 0x4bc   :  { %752 = vst [vmem:[%s1160_s3] sm:$0x3f] %v751_v16 }

</bundles_post_ra>
